<compile_context>
chip_gen: v7x
topology: tpu7x:2x2x1
jax: 0.10.0
libtpu: 0.0.40
codegen_flags: <defaults>
</compile_context>

<pallas_src>
import jax
import jax.numpy as jnp
from jax.experimental import pallas as pl
from jax.experimental.pallas import tpu as pltpu


def se_kernel(x_ref, w1t_ref, b1_ref, w2t_ref, b2_ref, o_ref):
    # x_ref block: (Nb, C, HWp) in the I/O dtype; weights/biases are small resident f32.
    x = x_ref[...]
    xf = x.astype(jnp.float32)

    # Squeeze: lane-sum over spatial (1/HW is folded into w1t; padded lanes are zero).
    pooled = jnp.sum(xf, axis=2)                                        # (Nb, C) f32

    # Excite: folded-BN 1x1 convs as batched matmuls; ReLU6 then hsigmoid.
    h = jnp.dot(pooled, w1t_ref[...],
                preferred_element_type=jnp.float32) + b1_ref[...]       # (Nb, Cr)
    h = jnp.clip(h, 0.0, 6.0)
    g = jnp.dot(h, w2t_ref[...],
                preferred_element_type=jnp.float32) + b2_ref[...]       # (Nb, C)
    g = jnp.clip(g + 3.0, 0.0, 6.0) * (1.0 / 6.0)

    # Scale: broadcast gate over the spatial (lane) axis; store in the I/O dtype.
    o_ref[...] = (xf * g[:, :, None]).astype(o_ref.dtype)


def se_forward(x_nchw, w1f, b1f, w2f, b2f, *, block_bytes=4 * 1024 * 1024):
    """x_nchw: (N, C, H, W), any float dtype (f32/bf16). Returns (N, C, H, W) same dtype."""
    N, C, H, W = x_nchw.shape
    Cr = w1f.shape[0]
    HW = H * W
    HWp = ((HW + 127) // 128) * 128            # lane-dense last dim
    dtype = x_nchw.dtype
    dsize = jnp.dtype(dtype).itemsize

    x = x_nchw.reshape(N, C, HW)
    if HWp != HW:
        x = jnp.pad(x, ((0, 0), (0, 0), (0, HWp - HW)))   # zero pad -> sum unaffected

    # Samples per grid step: large enough to amortize per-step overhead, small enough
    # that double-buffered in+out blocks stay far under scoped VMEM on v5e/v6e/v7x,
    # and keep >= 2 grid steps when possible so both v7x TensorCores are used.
    per_sample = max(C, 8) * HWp * dsize       # sublane-padded VMEM-layout estimate
    nb = max(1, min(N, block_bytes // per_sample))
    if N >= 2:
        nb = min(nb, (N + 1) // 2)
    Np = ((N + nb - 1) // nb) * nb
    if Np != N:
        x = jnp.pad(x, ((0, Np - N), (0, 0), (0, 0)))     # padded samples sliced off below

    # Fold the 1/(H*W) of the average pool into the first folded-conv weight; pre-transpose
    # so the kernel does (Nb,C)@(C,Cr) and (Nb,Cr)@(Cr,C).
    w1t = (w1f.astype(jnp.float32) / float(HW)).T          # (C, Cr)
    w2t = w2f.astype(jnp.float32).T                        # (Cr, C)
    b1r = b1f.astype(jnp.float32).reshape(1, Cr)
    b2r = b2f.astype(jnp.float32).reshape(1, C)

    out = pl.pallas_call(
        se_kernel,
        out_shape=jax.ShapeDtypeStruct((Np, C, HWp), dtype),
        grid=(Np // nb,),
        in_specs=[
            pl.BlockSpec((nb, C, HWp), lambda n: (n, 0, 0)),
            pl.BlockSpec((C, Cr), lambda n: (0, 0)),
            pl.BlockSpec((1, Cr), lambda n: (0, 0)),
            pl.BlockSpec((Cr, C), lambda n: (0, 0)),
            pl.BlockSpec((1, C), lambda n: (0, 0)),
        ],
        out_specs=pl.BlockSpec((nb, C, HWp), lambda n: (n, 0, 0)),
        compiler_params=pltpu.CompilerParams(
            dimension_semantics=("parallel",),
            vmem_limit_bytes=32 * 1024 * 1024),
    )(x, w1t, b1r, w2t, b2r)

    return out[:N, :, :HW].reshape(N, C, H, W)


def fold_bn(weight, gamma, beta, mean, var, eps=1e-5):
    """Fold inference-mode BatchNorm into a bias-free 1x1 conv weight (Cout, Cin)."""
    scale = gamma / jnp.sqrt(var + eps)          # (Cout,)
    w_f = weight * scale[:, None]                # (Cout, Cin)
    b_f = (beta - mean * scale)[:, None]         # (Cout, 1)
    return w_f.astype(jnp.float32), b_f.astype(jnp.float32)


def se_reference(x, w1f, b1f, w2f, b2f):
    """Pure-JAX reference for validation (computes in f32)."""
    xf = x.astype(jnp.float32)
    pooled = jnp.mean(xf, axis=(2, 3))                              # (N, C)
    h = jnp.clip(pooled @ w1f.T + b1f[:, 0], 0.0, 6.0)              # (N, Cr)
    g = jnp.clip((h @ w2f.T + b2f[:, 0]) + 3.0, 0.0, 6.0) / 6.0     # (N, C)
    return xf * g[:, :, None, None]


if __name__ == "__main__":
    # SE(in_channels=4, reduce=4) parameters.
    C, reduce = 4, 4
    Cr = C // reduce

    key = jax.random.PRNGKey(0)
    ks = jax.random.split(key, 12)

    w1 = jax.random.normal(ks[1], (Cr, C), dtype=jnp.float32) * 0.5   # Conv2d(C, Cr, 1, bias=False)
    w2 = jax.random.normal(ks[2], (C, Cr), dtype=jnp.float32) * 0.5   # Conv2d(Cr, C, 1, bias=False)
    g1 = 1.0 + 0.1 * jax.random.normal(ks[3], (Cr,), dtype=jnp.float32)
    b1 = 0.1 * jax.random.normal(ks[4], (Cr,), dtype=jnp.float32)
    m1 = 0.1 * jax.random.normal(ks[5], (Cr,), dtype=jnp.float32)
    v1 = jnp.abs(1.0 + 0.1 * jax.random.normal(ks[6], (Cr,), dtype=jnp.float32))
    g2 = 1.0 + 0.1 * jax.random.normal(ks[7], (C,), dtype=jnp.float32)
    b2 = 0.1 * jax.random.normal(ks[8], (C,), dtype=jnp.float32)
    m2 = 0.1 * jax.random.normal(ks[9], (C,), dtype=jnp.float32)
    v2 = jnp.ones((C,), dtype=jnp.float32)

    w1f, b1f = fold_bn(w1, g1, b1, m1, v1)
    w2f, b2f = fold_bn(w2, g2, b2, m2, v2)

    # 1) f32, spatial already a multiple of 128 (H*W = 256): tight check.
    x_a = jax.random.normal(ks[0], (2, C, 16, 16), dtype=jnp.float32)
    out_a = jax.block_until_ready(se_forward(x_a, w1f, b1f, w2f, b2f))
    ref_a = se_reference(x_a, w1f, b1f, w2f, b2f)
    assert out_a.shape == x_a.shape
    assert jnp.allclose(out_a, ref_a, atol=1e-5, rtol=1e-5), "f32 mismatch vs reference"

    # 2) f32, spatial NOT a multiple of 128 (7*7=49) and odd N: exercises HW/N padding path.
    x_b = jax.random.normal(ks[10], (3, C, 7, 7), dtype=jnp.float32)
    out_b = jax.block_until_ready(se_forward(x_b, w1f, b1f, w2f, b2f))
    ref_b = se_reference(x_b, w1f, b1f, w2f, b2f)
    assert out_b.shape == x_b.shape
    assert jnp.allclose(out_b, ref_b, atol=1e-5, rtol=1e-5), "padded-HW mismatch vs reference"

    # 3) bf16 activations (half the HBM traffic); gate math stays f32 inside the kernel.
    x_c = x_a.astype(jnp.bfloat16)
    out_c = jax.block_until_ready(se_forward(x_c, w1f, b1f, w2f, b2f))
    ref_c = se_reference(x_c, w1f, b1f, w2f, b2f)
    assert out_c.dtype == jnp.bfloat16 and out_c.shape == x_c.shape
    assert jnp.allclose(out_c.astype(jnp.float32), ref_c, atol=5e-2, rtol=5e-2), \
        "bf16 mismatch vs reference"

    print("KERNEL_OK")
</pallas_src>

<mosaic_0001>
module attributes {stable_mosaic.version = 11 : i64} {
  func.func @se_kernel(%arg0: i32, %arg1: memref<1x4x256xf32, #tpu.memory_space<vmem>>, %arg2: memref<4x1xf32, #tpu.memory_space<vmem>>, %arg3: memref<1x1xf32, #tpu.memory_space<vmem>>, %arg4: memref<1x4xf32, #tpu.memory_space<vmem>>, %arg5: memref<1x4xf32, #tpu.memory_space<vmem>>, %arg6: memref<1x4x256xf32, #tpu.memory_space<vmem>>) attributes {dimension_semantics = [#tpu.dimension_semantics<parallel>], iteration_bounds = array<i64: 2>, scalar_prefetch = 0 : i64, scratch_operands = 0 : i64, tpu.core_type = #tpu.core_type<tc>, window_params = [{transform_indices = @transform_0, window_bounds = array<i64: 1, 4, 256>}, {pipeline_mode = #tpu.pipeline_mode<synchronous>, transform_indices = @transform_1, window_bounds = array<i64: 4, 1>}, {pipeline_mode = #tpu.pipeline_mode<synchronous>, transform_indices = @transform_2, window_bounds = array<i64: 1, 1>}, {pipeline_mode = #tpu.pipeline_mode<synchronous>, transform_indices = @transform_3, window_bounds = array<i64: 1, 4>}, {pipeline_mode = #tpu.pipeline_mode<synchronous>, transform_indices = @transform_4, window_bounds = array<i64: 1, 4>}, {transform_indices = @transform_5, window_bounds = array<i64: 1, 4, 256>}]} {
    %c0 = arith.constant 0 : index
    %c0_0 = arith.constant 0 : index
    %c0_1 = arith.constant 0 : index
    %0 = vector.load %arg1[%c0, %c0_0, %c0_1] : memref<1x4x256xf32, #tpu.memory_space<vmem>>, vector<1x4x256xf32>
    %cst = arith.constant dense<0.000000e+00> : vector<1x4xf32>
    %1 = vector.multi_reduction <add>, %0, %cst [2] : vector<1x4x256xf32> to vector<1x4xf32>
    %c0_2 = arith.constant 0 : index
    %c0_3 = arith.constant 0 : index
    %2 = vector.load %arg2[%c0_2, %c0_3] : memref<4x1xf32, #tpu.memory_space<vmem>>, vector<4x1xf32>
    %cst_4 = arith.constant dense<0.000000e+00> : vector<1x1xf32>
    %3 = tpu.matmul %1, %2, %cst_4 {dimension_numbers = #tpu.dot_dimension_numbers<[1], [0], [0], [1], [0, 0, 1, 1], [], []>} : vector<1x4xf32>, vector<4x1xf32>, vector<1x1xf32> -> vector<1x1xf32>
    %c0_5 = arith.constant 0 : index
    %c0_6 = arith.constant 0 : index
    %4 = vector.load %arg3[%c0_5, %c0_6] : memref<1x1xf32, #tpu.memory_space<vmem>>, vector<1x1xf32>
    %5 = arith.addf %3, %4 : vector<1x1xf32>
    %cst_7 = arith.constant 0.000000e+00 : f32
    %cst_8 = arith.constant 6.000000e+00 : f32
    %6 = vector.broadcast %cst_7 : f32 to vector<1x1xf32>
    %7 = arith.maximumf %6, %5 : vector<1x1xf32>
    %8 = vector.broadcast %cst_8 : f32 to vector<1x1xf32>
    %9 = arith.minimumf %8, %7 : vector<1x1xf32>
    %c0_9 = arith.constant 0 : index
    %c0_10 = arith.constant 0 : index
    %10 = vector.load %arg4[%c0_9, %c0_10] : memref<1x4xf32, #tpu.memory_space<vmem>>, vector<1x4xf32>
    %cst_11 = arith.constant dense<0.000000e+00> : vector<1x4xf32>
    %11 = tpu.matmul %9, %10, %cst_11 {dimension_numbers = #tpu.dot_dimension_numbers<[1], [0], [0], [1], [0, 0, 1, 1], [], []>} : vector<1x1xf32>, vector<1x4xf32>, vector<1x4xf32> -> vector<1x4xf32>
    %c0_12 = arith.constant 0 : index
    %c0_13 = arith.constant 0 : index
    %12 = vector.load %arg5[%c0_12, %c0_13] : memref<1x4xf32, #tpu.memory_space<vmem>>, vector<1x4xf32>
    %13 = arith.addf %11, %12 : vector<1x4xf32>
    %cst_14 = arith.constant 3.000000e+00 : f32
    %14 = vector.broadcast %cst_14 : f32 to vector<1x4xf32>
    %15 = arith.addf %13, %14 : vector<1x4xf32>
    %cst_15 = arith.constant 0.000000e+00 : f32
    %cst_16 = arith.constant 6.000000e+00 : f32
    %16 = vector.broadcast %cst_15 : f32 to vector<1x4xf32>
    %17 = arith.maximumf %16, %15 : vector<1x4xf32>
    %18 = vector.broadcast %cst_16 : f32 to vector<1x4xf32>
    %19 = arith.minimumf %18, %17 : vector<1x4xf32>
    %cst_17 = arith.constant 0.166666672 : f32
    %20 = vector.broadcast %cst_17 : f32 to vector<1x4xf32>
    %21 = arith.mulf %19, %20 : vector<1x4xf32>
    %22 = vector.shape_cast %21 : vector<1x4xf32> to vector<1x4x1xf32>
    %23 = vector.broadcast %22 : vector<1x4x1xf32> to vector<1x4x256xf32>
    %24 = arith.mulf %0, %23 : vector<1x4x256xf32>
    %c0_18 = arith.constant 0 : index
    %c0_19 = arith.constant 0 : index
    %c0_20 = arith.constant 0 : index
    %25 = vector.load %arg6[%c0_18, %c0_19, %c0_20] : memref<1x4x256xf32, #tpu.memory_space<vmem>>, vector<1x4x256xf32>
    tpu.vector_store %arg6[%c0_18, %c0_19, %c0_20], %24 {strides = array<i32>} : memref<1x4x256xf32, #tpu.memory_space<vmem>>, vector<1x4x256xf32>,
    return
  }
  func.func @transform_0(%arg0: i32) -> (i32, i32, i32) {
    %c0_i32 = arith.constant 0 : i32
    %c0_i32_0 = arith.constant 0 : i32
    %c0_i32_1 = arith.constant 0 : i32
    return %arg0, %c0_i32, %c0_i32_0 : i32, i32, i32
  }
  func.func @transform_1(%arg0: i32) -> (i32, i32) {
    %c0_i32 = arith.constant 0 : i32
    %c0_i32_0 = arith.constant 0 : i32
    %c0_i32_1 = arith.constant 0 : i32
    return %c0_i32, %c0_i32_0 : i32, i32
  }
  func.func @transform_2(%arg0: i32) -> (i32, i32) {
    %c0_i32 = arith.constant 0 : i32
    %c0_i32_0 = arith.constant 0 : i32
    %c0_i32_1 = arith.constant 0 : i32
    return %c0_i32, %c0_i32_0 : i32, i32
  }
  func.func @transform_3(%arg0: i32) -> (i32, i32) {
    %c0_i32 = arith.constant 0 : i32
    %c0_i32_0 = arith.constant 0 : i32
    %c0_i32_1 = arith.constant 0 : i32
    return %c0_i32, %c0_i32_0 : i32, i32
  }
  func.func @transform_4(%arg0: i32) -> (i32, i32) {
    %c0_i32 = arith.constant 0 : i32
    %c0_i32_0 = arith.constant 0 : i32
    %c0_i32_1 = arith.constant 0 : i32
    return %c0_i32, %c0_i32_0 : i32, i32
  }
  func.func @transform_5(%arg0: i32) -> (i32, i32, i32) {
    %c0_i32 = arith.constant 0 : i32
    %c0_i32_0 = arith.constant 0 : i32
    %c0_i32_1 = arith.constant 0 : i32
    return %arg0, %c0_i32, %c0_i32_0 : i32, i32, i32
  }
}

</mosaic_0001>

<bundles_post_ra>
// kernel: tpu_custom_call.1
= control target key start
LH: loop header
LB: loop body
LE: loop exit
PB: predicated region body
PF: predicated region fallthrough
CT: control target
= control target key end

     0   :  { %s921_s0 = inlined_call_operand.hbm [shape: f32[2,4,256], index: 0, kind: input, shape index: {}]   ;;  %s922_s1 = inlined_call_operand.vmem [shape: f32[4,1], index: 1, kind: input, shape index: {}]   ;;  %s923_s2 = inlined_call_operand.<no memory space> [shape: f32[1,1], index: 2, kind: input, shape index: {}]   ;;  %s924_s3 = inlined_call_operand.vmem [shape: f32[1,4], index: 3, kind: input, shape index: {}]   ;;  %s925_s4 = inlined_call_operand.vmem [shape: f32[1,4], index: 4, kind: input, shape index: {}]   ;;  %s926_s5 = inlined_call_operand.hbm [shape: f32[2,4,256], index: 5, kind: output, shape index: {}]  }
   0x1   :  { %v10_v0 = vstv %s923_s2 }
   0x2   :  { %11 = vst [vmem:[#allocation2] sm:$0x1] %v10_v0 }
   0x3   :  { %12 = vsyncpa [#allocation4], 0 }
   0x4   :  { %14 = vsyncpa [#allocation4 + $0x1], 0 }
   0x5   :  { %15 = vsyncpa [#allocation5], 0 }
   0x6   :  { %17 = vsyncpa [#allocation5 + $0x1], 0  ;;  %s747_s20 = smov 0   ;;  %s749_s21 = smov 0  }
   0x7   :  { %s751_s22 = smov 0   ;;  %s753_s23 = smov 0  }
   0x8 LB: > { %s768_s2 = sadd.s32 4294967295, %s707_s23   ;;  %s527_s24 = sadd.s32 4294967294, %s707_s23   ;;  %s707_s23 = sphi %s753_s23, %s941_s23   ;;  %s703_s22 = sphi %s751_s22, %s940_s22   ;;  %s699_s21 = sphi %s749_s21, %s939_s21   ;;  %s695_s20 = sphi %s747_s20, %s938_s20  }
   0x9   : > { %s772_s25 = sadd.s32 1, %s707_s23   ;;  %s30_s26 = sadd.s32 1, %s703_s22 }
   0xa   : > { %s27_s27 = ssub.s32 %s707_s23, %s772_s25  ;;  %p37_p0 = scmp.ne.s32.totalorder %s703_s22, %s699_s21 }
   0xb   : > { %p28_p1 = scmp.eq.s32.totalorder %s27_s27, 0  ;;  %p38_p2 = scmp.eq.s32.totalorder %s707_s23, 0 }
   0xc   : > { %p43_p3 = scmp.ne.s32.totalorder %s699_s21, %s695_s20  ;;  %p44_p4 = scmp.eq.s32.totalorder %s768_s2, 0 }
   0xd   : > { %s784_s28 = scalar_select %p28_p1, %s703_s22, %s30_s26  }
   0xe   : > { %p786_p5 = por %p38_p2, %p37_p0  ;;  %p790_p6 = por %p44_p4, %p43_p3 }
   0xf   : > { %p151_p7 = scmp.eq.s32.totalorder %s768_s2, 1  ;;  %p157_p8 = scmp.eq.s32.totalorder %s527_s24, 1 }
  0x10   : > { %p573_p10 = scmp.lt.s32.totalorder %s707_s23, 2  ;;  %s189_s8 = sand.u32 1, %s703_s22  }
  0x11   : > { %p797_p11 = por %p151_p7, %p37_p0  ;;  %p801_p12 = por %p157_p8, %p43_p3 }
  0x12   : > { %s545_s9 = sshll.u32 %s707_s23, 7  ;;  %s530_s10 = sshll.u32 %s189_s8, 3 }
  0x13   : > { %s930_s6 = scalar_select %p797_p11, 1, 0 }
  0x14   : > { %s931_s7 = scalar_select %p801_p12, 1, 0 }
  0x15   : > { %s810_s13 = scalar_lea.hbm %s921_s0, %s545_s9  ;;  %s193_s14 = scalar_lea.vmem [#allocation3], %s530_s10 }
  0x16   : > { %s201_s15 = sshll.u32 %s193_s14, 4  ;;  %p814_p13 = pnand %p573_p10, %p786_p5  ;;  %s818_s15 = int_to_ptr.vmem [resolvable:$true] %s201_s15 }
  0x17   : > { %s190_s17 = scalar_lea.sflag [#allocation4], %s189_s8  ;;  %s611_s18 = scalar_lea.hbm %s810_s13, 128 }
  0x18   : > { %p612_p2 = scmp.ne.s32.totalorder %s810_s13, %s611_s18  ;;  %p613_p3 = pneg %p814_p13 }
  0x19   : > { %s616_s26 = scalar_lea.hbm %s921_s0, 256  ;;  %p617_p5 = scmp.lt.u32.totalorder %s810_s13, %s921_s0 }
  0x1a   : > { %p614_p4 = pnand %p613_p3, %p612_p2  ;;  %p618_p8 = scmp.lt.u32.totalorder %s616_s26, %s611_s18 }
  0x1b   : > { %p620_p9 = scmp.lt.u32.totalorder %s611_s18, %s810_s13 }
  0x1c   : > { %p615_p7 = pneg %p614_p4  ;;  %p619_p10 = por %p618_p8, %p617_p5 }
  0x1e   : > { %p621_p0 = por %p620_p9, %p619_p10 }
  0x20   : > { %p622_p1 = pnand %p621_p0, %p615_p7 }
  0x22   : > { %625 = shalt.err (!%p622_p1)
}
  0x23   : > { %s626_s8 = scalar_lea.vmem %s818_s15, 128  ;;  %s709_s9 = smov [#allocation3]  }
  0x24   : > { %p627_p2 = scmp.ne.s32.totalorder %s818_s15, %s626_s8  ;;  %s631_s10 = sshll.u32 %s709_s9, 4  ;;  %s632_s10 = int_to_ptr.vmem [resolvable:$false] %s631_s10 }
  0x25   : > { %s633_s11 = scalar_lea.vmem %s632_s10, 256  ;;  %p634_p11 = scmp.lt.s32.totalorder %s818_s15, %s632_s10 }
  0x26   : > { %p629_p4 = pnand %p627_p2, %p613_p3  ;;  %p635_p5 = scmp.lt.s32.totalorder %s633_s11, %s626_s8 }
  0x28   : > { %p630_p12 = pneg %p629_p4  ;;  %p636_p8 = por %p635_p5, %p634_p11 }
  0x2a   : > { %p637_p9 = pnand %p636_p8, %p630_p12 }
  0x2c   : > { %640 = shalt.err (!%p637_p9)
}
  0x2d   : > { %568 = dma.hbm_to_vmem [thread:$0]  (!%p814_p13), %s810_s13, 128, %s818_s15, %s190_s17  }
  0x2e   : > { %p933_p0 = scmp.lt.s32.totalorder %s707_s23, 3  ;;  %p934_p1 = scmp.ge.s32.totalorder %s707_s23, 1 }
  0x30   : > { %p207_p3 = pnand %p934_p1, %p933_p0 }
  0x31   : > { %s852_s12 = sand.u32 (!%p207_p3), 1, %s699_s21  }
  0x32   : > { %210 = sbr.rel (%p207_p3) target bundleno = 783 (0x30f), region = 40  ;;  %s534_s14 = sshll.u32 (!%p207_p3), %s852_s12, 3 }
  0x33   : > { %s213_s18 = scalar_lea.sflag (!%p207_p3), [#allocation4], %s852_s12  ;;  %s216_s16 = scalar_lea.vmem (!%p207_p3), [#allocation3], %s534_s14 }
  0x39   : > { %686 = dma.done.wait (%p790_p6), %s213_s18, 128  }
  0x3a   : > { %688 = vsyncadd (%p790_p6), %s213_s18, 4294967168  ;;  %vm247_vm0 = vcmask 1043456   ;;  %v243_v1 = vld [vmem:[%s216_s16] sm:$0xff]  ;;  %v710_v6 = vmov 0.0   ;;  %vm711_vm1 = vmmov 0   ;;  %v256_v8 = vlaneseq  ;;  %s546_s26 = sshll.u32 %s768_s2, 7 }
  0x3b   : > { %v245_v2 = vcombine.high %v243_v1, %v243_v1  ;;  %v248_v3 = vsel %vm247_vm0, %v243_v1, 0.0  ;;  %551 = vmatprep.subr.mxu0 %v710_v6  ;;  %v253_v7 = vld [vmem:[%s922_s1] sm:$0xf]  ;;  %556 = vmatprep.subr.mxu1 %v710_v6  ;;  %vm262_vm2 = vcmask 31744   ;;  %vm346_vm3 = vcmask 1040384   ;;  %s242_s27 = scalar_lea.vmem [#allocation6], %s534_s14  ;;  %s877_s10 = scalar_lea.hbm %s926_s5, %s546_s26 }
  0x3c   : > { %552 = vmatpush3.msk.msra.mxu0 %vm247_vm0, %v253_v7  ;;  %553 = vmatprep.mubr.msk.f32.mxu0 %vm711_vm1, %v710_v6  ;;  %v257_v9 = vand.u32 127, %v256_v8  ;;  %v259_v10 = vshrl.u32 %v256_v8, 7  ;;  %v340_v14 = vld [vmem:[%s924_s3] sm:$0x1]  ;;  %vm342_vm4 = vcmask 7168   ;;  %s457_s29 = sshll.u32 %s242_s27, 4  ;;  %s879_s29 = int_to_ptr.vmem [resolvable:$true] %s457_s29 }
  0x3d   : > { %v249_v4 = vsel %vm247_vm0, %v245_v2, 0.0  ;;  %558 = vmatprep.mubr.msk.f32.mxu1 %vm711_vm1, %v710_v6  ;;  %557 = vmatpush3.msk.msra.mxu1 %vm346_vm3, %v340_v14  ;;  %v254_v15 = vld [vmem:[#allocation2] sm:$0x1]  ;;  %v712_v31 = vmov 839922192   ;;  %s443_s11 = scalar_lea.sflag [#allocation5], %s852_s12 }
  0x3e   : > { %v250_v5 = vadd.f32 %v249_v4, %v248_v3  ;;  %v260_v11 = vsub.s32 %v257_v9, %v259_v10  ;;  %v341_v21 = vld [vmem:[%s925_s4] sm:$0x1]  ;;  %v426_v28 = vsub.s32 0, %v259_v10  ;;  %v433_v32 = vunpack.c.l.s4 %v712_v31  ;;  %s641_s18 = scalar_lea.vmem %s879_s29, 128  ;;  %p935_p11 = scmp.ne.s32.totalorder %s930_s6, 0 }
  0x3f   : > { %p642_p6 = scmp.ne.s32.totalorder %s879_s29, %s641_s18  ;;  %s713_s2 = smov [#allocation6]  }
  0x40   : > { %251 = vadd.xlane.f32.xlu0 %v250_v5  ;;  %v434_v33 = vunpack.c.0.s8 %v433_v32  ;;  %s645_s14 = sshll.u32 %s713_s2, 4  ;;  %s646_s14 = int_to_ptr.vmem [resolvable:$false] %s645_s14 }
  0x41   : > { %p643_p12 = pnand %p642_p6, %p935_p11  ;;  %s647_s16 = scalar_lea.vmem %s646_s14, 256 }
  0x42   : > { %v437_v34 = vsub.s32 %v434_v33, %v259_v10  ;;  %p648_p7 = scmp.lt.s32.totalorder %s879_s29, %s646_s14  ;;  %p649_p10 = scmp.lt.s32.totalorder %s647_s16, %s641_s18 }
  0x43   : > { %p644_p13 = pneg %p643_p12 }
  0x44   : > { %p650_p2 = por %p649_p10, %p648_p7 }
  0x46   : > { %p651_p4 = pnand %p650_p2, %p644_p13 }
  0xcd   : > { %v252_v12 = vpop.xlane.xlu0 %251 }
  0xce   : > { %v261_v13 = vrot.slane %v252_v12, %v260_v11 }
  0xd0   : > { %554 = vmatmul.mubr.msk.f32.vlgmr.msra.gmra.mrb[0].mxu0 %vm262_vm2, %v261_v13 }
 0x1a3   : > { %v334_v16 = vpop.f32.mrb[0].mxu0 }
 0x1a4   : > { %v335_v17 = vadd.f32 %v334_v16, %v254_v15  ;;  %v555_v18 = vpop.f32.mrb[1].mxu0 }
 0x1a6   : > { %v338_v19 = vmax.f32 %v335_v17, 0.0 }
 0x1a8   : > { %v339_v20 = vmin.f32 %v338_v19, 6.0 }
 0x1aa   : > { %559 = vmatmul.mubr.msk.f32.vlgmr.msra.gmra.mrb[0].mxu1 %vm342_vm4, %v339_v20 }
 0x27d   : > { %v416_v22 = vpop.f32.mrb[0].mxu1 }
 0x27e   : > { %v417_v23 = vadd.f32 %v416_v22, %v341_v21  ;;  %v560_v24 = vpop.f32.mrb[1].mxu1 }
 0x280   : > { %v420_v25 = vadd.f32 3.0, %v417_v23 }
 0x282   : > { %v421_v26 = vmax.f32 %v420_v25, 0.0 }
 0x284   : > { %v422_v27 = vmin.f32 %v421_v26, 6.0 }
 0x286   : > { %v423_v29 = vmul.f32 0.16666667, %v422_v27 }
 0x288   : > { %v427_v30 = vrot.slane %v423_v29, %v426_v28 }
 0x28a   : > { %429 = vbcast.lane.b32.xlu0 %v427_v30, 256 }
 0x2fc   : > { %v430_v35 = vpop.permute.xlu0 %429 }
 0x2fd   : > { %v438_v36 = vrot.slane %v430_v35, %v437_v34 }
 0x2ff   : > { %v440_v37 = vmul.f32 %v438_v36, %v243_v1 }
 0x301   : > { %441 = vst [vmem:[%s242_s27] sm:$0xff] %v440_v37 }
 0x302   : > { %654 = shalt.err (!%p651_p4)
}
 0x303   : > { %s655_s12 = scalar_lea.hbm %s877_s10, 128  ;;  %s659_s30 = scalar_lea.hbm %s926_s5, 256 }
 0x304   : > { %p656_p5 = scmp.ne.s32.totalorder %s877_s10, %s655_s12  ;;  %p660_p0 = scmp.lt.u32.totalorder %s877_s10, %s926_s5 }
 0x305   : > { %p661_p1 = scmp.lt.u32.totalorder %s659_s30, %s655_s12  ;;  %p663_p6 = scmp.lt.u32.totalorder %s655_s12, %s877_s10 }
 0x306   : > { %p657_p8 = pnand %p656_p5, %p935_p11 }
 0x307   : > { %p662_p3 = por %p661_p1, %p660_p0 }
 0x308   : > { %p658_p9 = pneg %p657_p8 }
 0x309   : > { %p664_p12 = por %p663_p6, %p662_p3 }
 0x30b   : > { %p665_p13 = pnand %p664_p12, %p658_p9 }
 0x30d   : > { %668 = shalt.err (!%p665_p13)
}
 0x30e   : > { %563 = dma.vmem_to_hbm [thread:$0]  (%p935_p11), %s879_s29, 128, %s877_s10, %s443_s11  }
 0x30f PF: > { %s469_s24 = sand.u32 1, %s695_s20   ;;  %p936_p7 = scmp.ne.s32.totalorder %s931_s7, 0 }
 0x310   : > { %p937_p10 = scmp.ge.s32.totalorder %s707_s23, 2  ;;  %s470_s26 = scalar_lea.sflag [#allocation5], %s469_s24 }
 0x312   : > { %p570_p2 = pnand %p937_p10, %p936_p7 }
 0x314   : > { %690 = dma.done.wait (!%p570_p2), %s470_s26, 128  }
 0x315   : > { %692 = vsyncadd (!%p570_p2), %s470_s26, 4294967168  ;;  %p20_p4 = scmp.ge.s32.totalorder %s772_s25, 4   ;;  %s938_s20 = smov %s699_s21 }
 0x316   : > { %s939_s21 = smov %s703_s22  ;;  %s940_s22 = smov %s784_s28 }
 0x317   : > { %s941_s23 = smov %s772_s25  ;;  %22 = sbr.rel (!%p20_p4) target bundleno = 8 (0x8), region = 85 }
 0x31e   :  { %475 = vsyncpa [#allocation4], 1 }
 0x31f   :  { %477 = vsyncpa [#allocation4 + $0x1], 1 }
 0x320   :  { %478 = vsyncpa [#allocation5], 1 }
 0x321   :  { %480 = vsyncpa [#allocation5 + $0x1], 1 }

</bundles_post_ra>
